<compile_context>
chip_gen: v7x
topology: tpu7x:2x2x1
jax: 0.10.0
libtpu: 0.0.40
codegen_flags: <defaults>
</compile_context>

<pallas_src>
import functools

import numpy as np
import jax
import jax.numpy as jnp
from jax.experimental import pallas as pl
from jax.experimental.pallas import tpu as pltpu


# ----------------------------------------------------------------------------------
# Schedule (mirrors the torch buffers, computed in float64 then cast like extract())
# ----------------------------------------------------------------------------------
def cosine_beta_schedule(T, s=0.008):
    steps = T + 1
    t = np.linspace(0.0, T, steps, dtype=np.float64)
    alphas_cumprod = np.cos((t / T + s) / (1 + s) * np.pi * 0.5) ** 2
    alphas_cumprod = alphas_cumprod / alphas_cumprod[0]
    betas = 1.0 - alphas_cumprod[1:] / alphas_cumprod[:-1]
    return np.clip(betas, 0.0, 0.999)


def make_schedule(T):
    betas = cosine_beta_schedule(T)                                  # (T,)
    alphas = 1.0 - betas
    alphas_bar = np.cumprod(alphas)
    alphas_bar_prev = np.concatenate([[1.0], alphas_bar[:-1]])[:T]
    coeff1 = np.sqrt(1.0 / alphas)
    coeff2 = coeff1 * (1.0 - alphas) / np.sqrt(1.0 - alphas_bar)
    posterior_var = betas * (1.0 - alphas_bar_prev) / (1.0 - alphas_bar)
    variance = np.concatenate([posterior_var[1:2], betas[1:]])       # cat([pv[1:2], betas[1:]])
    return (jnp.asarray(coeff1, jnp.float32),
            jnp.asarray(coeff2, jnp.float32),
            jnp.asarray(np.sqrt(variance), jnp.float32))


def _make_noise_table(seed, T, C, BN):
    noise = jax.random.normal(jax.random.PRNGKey(seed), (T, C, BN), jnp.float32)
    return noise.at[0].set(0.0)          # time_step == 0 adds no noise (matches reference)


def _round_up(v, m):
    return ((v + m - 1) // m) * m


def _choose_bn_tile(C, BN_pad, budget_bytes=8 << 20):
    """Largest lane tile (multiple of 128, divides BN_pad) fitting a per-tile VMEM budget."""
    c_pad = max(8, _round_up(C, 8))
    # resident per tile ~ out(x_t) + x_T + label bias + double-buffered noise ≈ 5 buffers
    max_tile = budget_bytes // (5 * c_pad * 4)
    max_tile = max(128, (max_tile // 128) * 128)
    if BN_pad <= max_tile:
        return BN_pad
    tile = max_tile
    while BN_pad % tile:
        tile -= 128
    return tile


# ----------------------------------------------------------------------------------
# Kernel: grid = (BN_tiles, T); one inner grid step == one reverse diffusion timestep.
# x_t lives in out_ref (constant block index across T) — no extra scratch.
# ----------------------------------------------------------------------------------
def _sampler_kernel(c1_ref, c2_ref, sv_ref,              # SMEM: (T,) schedule scalars
                    xT_ref, w_ref, gl_ref, temb_ref,     # VMEM: x_T tile, (C,C) weight,
                    noise_ref,                           #       label bias tile, (C,1) temb[t],
                    out_ref,                             #       noise tile ; output/x_t tile
                    *, C):
    i = pl.program_id(1)                 # inner ("arbitrary") axis: reverse-time index
    T = pl.num_programs(1)
    t = T - 1 - i                        # time_step = reversed(range(T))

    @pl.when(i == 0)
    def _():
        out_ref[...] = xT_ref[...]       # x_t <- x_T for this lane tile

    x = out_ref[...]                     # (C, bn_tile), resident across the T axis
    w = w_ref[...]                       # (C, C)

    # --- synthetic model, 1x1 conv over channels as C unrolled VPU broadcast-FMAs -----
    wx = w[:, 0:1] * x[0:1, :]
    for k in range(1, C):
        wx = wx + w[:, k:k + 1] * x[k:k + 1, :]

    # guided eps = wx + time_emb[t] (lane-broadcast) + folded-CFG label bias (resident)
    eps = wx + temb_ref[...] + gl_ref[...]

    # --- x_{t-1} = coeff1[t]*x_t - coeff2[t]*eps + sqrt(var[t])*noise ------------------
    x_new = c1_ref[t] * x - c2_ref[t] * eps + sv_ref[t] * noise_ref[...]

    @pl.when(i < T - 1)
    def _():
        out_ref[...] = x_new

    @pl.when(i == T - 1)                 # final step -> clip to [-1, 1]
    def _():
        out_ref[...] = jnp.clip(x_new, -1.0, 1.0)


# ----------------------------------------------------------------------------------
# Wrapper (parameter setup, CFG fold, layout conversion, pallas_call)
# ----------------------------------------------------------------------------------
def gaussian_diffusion_sample(x_T, labels, params, *, T, w, seed=0, bn_tile=None):
    """x_T: (B, C, H, W) float32 (NCHW), labels: (B,) int32."""
    B, C, H, Wd = x_T.shape
    N = H * Wd
    BN = B * N
    BN_pad = _round_up(BN, 128)                               # lane-dense output slabs

    coeff1, coeff2, sqrt_var = make_schedule(T)
    w1x1, time_emb, label_emb = params                        # (C,C), (T,C), (n_cls,C)

    # --- fold classifier-free guidance into one timestep-invariant label bias ----------
    lemb_c = label_emb[labels]                                # (B, C)  conditional
    lemb_u = label_emb[jnp.zeros_like(labels)]                # (B, C)  null label (index 0)
    g = (1.0 + w) * lemb_c - w * lemb_u                       # (B, C)
    glabel = jnp.broadcast_to(jnp.transpose(g, (1, 0))[:, :, None],
                              (C, B, N)).reshape(C, BN).astype(jnp.float32)

    temb = time_emb.reshape(T, C, 1).astype(jnp.float32)      # per-step (C,1) lane-broadcast bias

    # NCHW -> kernel layout (C, B*N)
    x_k = jnp.transpose(x_T.reshape(B, C, N), (1, 0, 2)).reshape(C, BN).astype(jnp.float32)

    # pre-sampled Gaussian noise per reverse step (zero at time_step == 0)
    noise = _make_noise_table(seed, T, C, BN)

    if BN_pad != BN:
        pad = BN_pad - BN
        x_k = jnp.pad(x_k, ((0, 0), (0, pad)))
        glabel = jnp.pad(glabel, ((0, 0), (0, pad)))
        noise = jnp.pad(noise, ((0, 0), (0, 0), (0, pad)))

    if bn_tile is None:
        bn_tile = _choose_bn_tile(C, BN_pad)
    num_tiles = BN_pad // bn_tile

    kernel = functools.partial(_sampler_kernel, C=C)

    out = pl.pallas_call(
        kernel,
        out_shape=jax.ShapeDtypeStruct((C, BN_pad), jnp.float32),
        grid=(num_tiles, T),
        in_specs=[
            pl.BlockSpec(memory_space=pltpu.MemorySpace.SMEM),                 # coeff1 (T,)
            pl.BlockSpec(memory_space=pltpu.MemorySpace.SMEM),                 # coeff2 (T,)
            pl.BlockSpec(memory_space=pltpu.MemorySpace.SMEM),                 # sqrt(var) (T,)
            pl.BlockSpec((C, bn_tile), lambda j, i: (0, j)),                   # x_T tile
            pl.BlockSpec((C, C), lambda j, i: (0, 0)),                         # 1x1 conv weight
            pl.BlockSpec((C, bn_tile), lambda j, i: (0, j)),                   # folded label bias
            pl.BlockSpec((None, C, 1), lambda j, i: (T - 1 - i, 0, 0)),        # time_emb[t] (C,1)
            pl.BlockSpec((None, C, bn_tile), lambda j, i: (T - 1 - i, 0, j)),  # noise[t] tile
        ],
        out_specs=pl.BlockSpec((C, bn_tile), lambda j, i: (0, j)),             # x_t accumulator
        compiler_params=pltpu.CompilerParams(
            dimension_semantics=("parallel", "arbitrary")),
    )(coeff1, coeff2, sqrt_var, x_k, w1x1, glabel, temb, noise)

    # kernel layout -> NCHW
    out = out[:, :BN]
    x0 = jnp.transpose(out.reshape(C, B, N), (1, 0, 2)).reshape(B, C, H, Wd)
    return x0


# ----------------------------------------------------------------------------------
# Pure-JAX reference (mirrors the torch module, same synthetic model & noise table)
# ----------------------------------------------------------------------------------
def _reference_sample(x_T, labels, params, *, T, w, seed=0):
    w1x1, time_emb, label_emb = params
    coeff1, coeff2, sqrt_var = make_schedule(T)
    B, C, H, Wd = x_T.shape
    N = H * Wd
    noise_tbl = _make_noise_table(seed, T, C, B * N)
    x_t = x_T.astype(jnp.float32)
    for time_step in reversed(range(T)):
        wx = jnp.einsum('ck,bkhw->bchw', w1x1, x_t)
        tb = time_emb[time_step][None, :, None, None]
        eps_c = wx + tb + label_emb[labels][:, :, None, None]
        eps_u = wx + tb + label_emb[jnp.zeros_like(labels)][:, :, None, None]
        eps = (1.0 + w) * eps_c - w * eps_u
        mean = coeff1[time_step] * x_t - coeff2[time_step] * eps
        n = jnp.transpose(noise_tbl[time_step].reshape(C, B, N),
                          (1, 0, 2)).reshape(B, C, H, Wd)
        x_t = mean + sqrt_var[time_step] * n
    return jnp.clip(x_t, -1.0, 1.0)


# ----------------------------------------------------------------------------------
if __name__ == "__main__":
    B, C, H, Wd = 2, 4, 16, 16
    T = 8
    w_guidance = 1.5
    NUM_CLASSES = 10

    key = jax.random.PRNGKey(0)
    k1, k2, k3, k4, k5 = jax.random.split(key, 5)

    # deterministic synthetic model parameters
    w1x1 = 0.1 * jax.random.normal(k1, (C, C), jnp.float32)
    time_emb = 0.1 * jax.random.normal(k2, (T, C), jnp.float32)
    label_emb = 0.1 * jax.random.normal(k3, (NUM_CLASSES, C), jnp.float32)
    label_emb = label_emb.at[0].set(0.0)          # index 0 == unconditional / null label

    # inputs
    x_T = jax.random.normal(k4, (B, C, H, Wd), jnp.float32)
    labels = jax.random.randint(k5, (B,), 1, NUM_CLASSES, dtype=jnp.int32)

    params = (w1x1, time_emb, label_emb)
    x_0 = gaussian_diffusion_sample(x_T, labels, params, T=T, w=w_guidance, seed=0)
    x_0 = jax.block_until_ready(x_0)

    assert x_0.shape == (B, C, H, Wd)
    assert not bool(jnp.isnan(x_0).any()), "nan in tensor."
    assert bool(jnp.all(x_0 >= -1.0)) and bool(jnp.all(x_0 <= 1.0))

    # correctness vs pure-JAX reference of the same module semantics
    x_ref = jax.block_until_ready(
        _reference_sample(x_T, labels, params, T=T, w=w_guidance, seed=0))
    max_diff = float(jnp.max(jnp.abs(x_0 - x_ref)))
    assert max_diff < 1e-2, f"mismatch vs reference: {max_diff}"

    print("KERNEL_OK")
</pallas_src>

<mosaic_0001>
module attributes {stable_mosaic.version = 11 : i64} {
  func.func @_sampler_kernel(%arg0: i32, %arg1: i32, %arg2: memref<8xf32, #tpu.memory_space<smem>>, %arg3: memref<8xf32, #tpu.memory_space<smem>>, %arg4: memref<8xf32, #tpu.memory_space<smem>>, %arg5: memref<4x512xf32, #tpu.memory_space<vmem>>, %arg6: memref<4x4xf32, #tpu.memory_space<vmem>>, %arg7: memref<4x512xf32, #tpu.memory_space<vmem>>, %arg8: memref<1x4x1xf32, #tpu.memory_space<vmem>>, %arg9: memref<1x4x512xf32, #tpu.memory_space<vmem>>, %arg10: memref<4x512xf32, #tpu.memory_space<vmem>>) attributes {dimension_semantics = [#tpu.dimension_semantics<parallel>, #tpu.dimension_semantics<arbitrary>], iteration_bounds = array<i64: 1, 8>, scalar_prefetch = 0 : i64, scratch_operands = 0 : i64, tpu.core_type = #tpu.core_type<tc>, window_params = [{transform_indices = @transform_0, window_bounds = array<i64: 8>}, {transform_indices = @transform_1, window_bounds = array<i64: 8>}, {transform_indices = @transform_2, window_bounds = array<i64: 8>}, {transform_indices = @transform_3, window_bounds = array<i64: 4, 512>}, {pipeline_mode = #tpu.pipeline_mode<synchronous>, transform_indices = @transform_4, window_bounds = array<i64: 4, 4>}, {transform_indices = @transform_5, window_bounds = array<i64: 4, 512>}, {transform_indices = @transform_6, window_bounds = array<i64: 1, 4, 1>}, {transform_indices = @transform_7, window_bounds = array<i64: 1, 4, 512>}, {transform_indices = @transform_8, window_bounds = array<i64: 4, 512>}]} {
    %c7_i32 = arith.constant 7 : i32
    %0 = arith.subi %c7_i32, %arg1 : i32
    %c0_i32 = arith.constant 0 : i32
    %1 = arith.cmpi eq, %arg1, %c0_i32 : i32
    %2 = arith.extui %1 : i1 to i32
    %c0_i32_0 = arith.constant 0 : i32
    %3 = arith.cmpi ne, %2, %c0_i32_0 : i32
    scf.if %3 {
      %c0_16 = arith.constant 0 : index
      %c0_17 = arith.constant 0 : index
      %57 = vector.load %arg5[%c0_16, %c0_17] : memref<4x512xf32, #tpu.memory_space<vmem>>, vector<4x512xf32>
      %c0_18 = arith.constant 0 : index
      %c0_19 = arith.constant 0 : index
      %58 = vector.load %arg10[%c0_18, %c0_19] : memref<4x512xf32, #tpu.memory_space<vmem>>, vector<4x512xf32>
      tpu.vector_store %arg10[%c0_18, %c0_19], %57 {strides = array<i32>} : memref<4x512xf32, #tpu.memory_space<vmem>>, vector<4x512xf32>,
    } else {
    }
    %c0 = arith.constant 0 : index
    %c0_1 = arith.constant 0 : index
    %4 = vector.load %arg10[%c0, %c0_1] : memref<4x512xf32, #tpu.memory_space<vmem>>, vector<4x512xf32>
    %c0_2 = arith.constant 0 : index
    %c0_3 = arith.constant 0 : index
    %5 = vector.load %arg6[%c0_2, %c0_3] : memref<4x4xf32, #tpu.memory_space<vmem>>, vector<4x4xf32>
    %6 = vector.extract_strided_slice %5 {offsets = [0, 0], sizes = [4, 1], strides = [1, 1]} : vector<4x4xf32> to vector<4x1xf32>
    %7 = vector.extract_strided_slice %4 {offsets = [0, 0], sizes = [1, 512], strides = [1, 1]} : vector<4x512xf32> to vector<1x512xf32>
    %8 = vector.broadcast %6 : vector<4x1xf32> to vector<4x512xf32>
    %9 = vector.broadcast %7 : vector<1x512xf32> to vector<4x512xf32>
    %10 = arith.mulf %8, %9 : vector<4x512xf32>
    %11 = vector.extract_strided_slice %5 {offsets = [0, 1], sizes = [4, 1], strides = [1, 1]} : vector<4x4xf32> to vector<4x1xf32>
    %12 = vector.extract_strided_slice %4 {offsets = [1, 0], sizes = [1, 512], strides = [1, 1]} : vector<4x512xf32> to vector<1x512xf32>
    %13 = vector.broadcast %11 : vector<4x1xf32> to vector<4x512xf32>
    %14 = vector.broadcast %12 : vector<1x512xf32> to vector<4x512xf32>
    %15 = arith.mulf %13, %14 : vector<4x512xf32>
    %16 = arith.addf %10, %15 : vector<4x512xf32>
    %17 = vector.extract_strided_slice %5 {offsets = [0, 2], sizes = [4, 1], strides = [1, 1]} : vector<4x4xf32> to vector<4x1xf32>
    %18 = vector.extract_strided_slice %4 {offsets = [2, 0], sizes = [1, 512], strides = [1, 1]} : vector<4x512xf32> to vector<1x512xf32>
    %19 = vector.broadcast %17 : vector<4x1xf32> to vector<4x512xf32>
    %20 = vector.broadcast %18 : vector<1x512xf32> to vector<4x512xf32>
    %21 = arith.mulf %19, %20 : vector<4x512xf32>
    %22 = arith.addf %16, %21 : vector<4x512xf32>
    %23 = vector.extract_strided_slice %5 {offsets = [0, 3], sizes = [4, 1], strides = [1, 1]} : vector<4x4xf32> to vector<4x1xf32>
    %24 = vector.extract_strided_slice %4 {offsets = [3, 0], sizes = [1, 512], strides = [1, 1]} : vector<4x512xf32> to vector<1x512xf32>
    %25 = vector.broadcast %23 : vector<4x1xf32> to vector<4x512xf32>
    %26 = vector.broadcast %24 : vector<1x512xf32> to vector<4x512xf32>
    %27 = arith.mulf %25, %26 : vector<4x512xf32>
    %28 = arith.addf %22, %27 : vector<4x512xf32>
    %c0_4 = arith.constant 0 : index
    %c0_5 = arith.constant 0 : index
    %c0_6 = arith.constant 0 : index
    %29 = vector.load %arg8[%c0_4, %c0_5, %c0_6] : memref<1x4x1xf32, #tpu.memory_space<vmem>>, vector<1x4x1xf32>
    %30 = vector.shape_cast %29 : vector<1x4x1xf32> to vector<4x1xf32>
    %31 = vector.broadcast %30 : vector<4x1xf32> to vector<4x512xf32>
    %32 = arith.addf %28, %31 : vector<4x512xf32>
    %c0_7 = arith.constant 0 : index
    %c0_8 = arith.constant 0 : index
    %33 = vector.load %arg7[%c0_7, %c0_8] : memref<4x512xf32, #tpu.memory_space<vmem>>, vector<4x512xf32>
    %34 = arith.addf %32, %33 : vector<4x512xf32>
    %35 = arith.index_cast %0 : i32 to index
    %36 = memref.load %arg2[%35] : memref<8xf32, #tpu.memory_space<smem>>
    %37 = vector.broadcast %36 : f32 to vector<4x512xf32>
    %38 = arith.mulf %37, %4 : vector<4x512xf32>
    %39 = arith.index_cast %0 : i32 to index
    %40 = memref.load %arg3[%39] : memref<8xf32, #tpu.memory_space<smem>>
    %41 = vector.broadcast %40 : f32 to vector<4x512xf32>
    %42 = arith.mulf %41, %34 : vector<4x512xf32>
    %43 = arith.subf %38, %42 : vector<4x512xf32>
    %44 = arith.index_cast %0 : i32 to index
    %45 = memref.load %arg4[%44] : memref<8xf32, #tpu.memory_space<smem>>
    %c0_9 = arith.constant 0 : index
    %c0_10 = arith.constant 0 : index
    %c0_11 = arith.constant 0 : index
    %46 = vector.load %arg9[%c0_9, %c0_10, %c0_11] : memref<1x4x512xf32, #tpu.memory_space<vmem>>, vector<1x4x512xf32>
    %47 = vector.shape_cast %46 : vector<1x4x512xf32> to vector<4x512xf32>
    %48 = vector.broadcast %45 : f32 to vector<4x512xf32>
    %49 = arith.mulf %48, %47 : vector<4x512xf32>
    %50 = arith.addf %43, %49 : vector<4x512xf32>
    %c7_i32_12 = arith.constant 7 : i32
    %51 = arith.cmpi slt, %arg1, %c7_i32_12 : i32
    %52 = arith.extui %51 : i1 to i32
    %c0_i32_13 = arith.constant 0 : i32
    %53 = arith.cmpi ne, %52, %c0_i32_13 : i32
    scf.if %53 {
      %c0_16 = arith.constant 0 : index
      %c0_17 = arith.constant 0 : index
      %57 = vector.load %arg10[%c0_16, %c0_17] : memref<4x512xf32, #tpu.memory_space<vmem>>, vector<4x512xf32>
      tpu.vector_store %arg10[%c0_16, %c0_17], %50 {strides = array<i32>} : memref<4x512xf32, #tpu.memory_space<vmem>>, vector<4x512xf32>,
    } else {
    }
    %c7_i32_14 = arith.constant 7 : i32
    %54 = arith.cmpi eq, %arg1, %c7_i32_14 : i32
    %55 = arith.extui %54 : i1 to i32
    %c0_i32_15 = arith.constant 0 : i32
    %56 = arith.cmpi ne, %55, %c0_i32_15 : i32
    scf.if %56 {
      %cst = arith.constant -1.000000e+00 : f32
      %cst_16 = arith.constant 1.000000e+00 : f32
      %57 = vector.broadcast %cst : f32 to vector<4x512xf32>
      %58 = arith.maximumf %57, %50 : vector<4x512xf32>
      %59 = vector.broadcast %cst_16 : f32 to vector<4x512xf32>
      %60 = arith.minimumf %59, %58 : vector<4x512xf32>
      %c0_17 = arith.constant 0 : index
      %c0_18 = arith.constant 0 : index
      %61 = vector.load %arg10[%c0_17, %c0_18] : memref<4x512xf32, #tpu.memory_space<vmem>>, vector<4x512xf32>
      tpu.vector_store %arg10[%c0_17, %c0_18], %60 {strides = array<i32>} : memref<4x512xf32, #tpu.memory_space<vmem>>, vector<4x512xf32>,
    } else {
    }
    return
  }
  func.func @transform_0(%arg0: i32, %arg1: i32) -> i32 {
    %c0_i32 = arith.constant 0 : i32
    %c0_i32_0 = arith.constant 0 : i32
    return %c0_i32 : i32
  }
  func.func @transform_1(%arg0: i32, %arg1: i32) -> i32 {
    %c0_i32 = arith.constant 0 : i32
    %c0_i32_0 = arith.constant 0 : i32
    return %c0_i32 : i32
  }
  func.func @transform_2(%arg0: i32, %arg1: i32) -> i32 {
    %c0_i32 = arith.constant 0 : i32
    %c0_i32_0 = arith.constant 0 : i32
    return %c0_i32 : i32
  }
  func.func @transform_3(%arg0: i32, %arg1: i32) -> (i32, i32) {
    %c0_i32 = arith.constant 0 : i32
    %c0_i32_0 = arith.constant 0 : i32
    return %c0_i32, %arg0 : i32, i32
  }
  func.func @transform_4(%arg0: i32, %arg1: i32) -> (i32, i32) {
    %c0_i32 = arith.constant 0 : i32
    %c0_i32_0 = arith.constant 0 : i32
    %c0_i32_1 = arith.constant 0 : i32
    return %c0_i32, %c0_i32_0 : i32, i32
  }
  func.func @transform_5(%arg0: i32, %arg1: i32) -> (i32, i32) {
    %c0_i32 = arith.constant 0 : i32
    %c0_i32_0 = arith.constant 0 : i32
    return %c0_i32, %arg0 : i32, i32
  }
  func.func @transform_6(%arg0: i32, %arg1: i32) -> (i32, i32, i32) {
    %c7_i32 = arith.constant 7 : i32
    %0 = arith.subi %c7_i32, %arg1 : i32
    %c0_i32 = arith.constant 0 : i32
    %c0_i32_0 = arith.constant 0 : i32
    %c0_i32_1 = arith.constant 0 : i32
    return %0, %c0_i32, %c0_i32_0 : i32, i32, i32
  }
  func.func @transform_7(%arg0: i32, %arg1: i32) -> (i32, i32, i32) {
    %c7_i32 = arith.constant 7 : i32
    %0 = arith.subi %c7_i32, %arg1 : i32
    %c0_i32 = arith.constant 0 : i32
    %c0_i32_0 = arith.constant 0 : i32
    return %0, %c0_i32, %arg0 : i32, i32, i32
  }
  func.func @transform_8(%arg0: i32, %arg1: i32) -> (i32, i32) {
    %c0_i32 = arith.constant 0 : i32
    %c0_i32_0 = arith.constant 0 : i32
    return %c0_i32, %arg0 : i32, i32
  }
}

</mosaic_0001>

<bundles_post_ra>
// kernel: tpu_custom_call.1
= control target key start
LH: loop header
LB: loop body
LE: loop exit
PB: predicated region body
PF: predicated region fallthrough
CT: control target
= control target key end

     0   :  { %s1492_s0 = inlined_call_operand.hbm [shape: f32[8], index: 0, kind: input, shape index: {}]   ;;  %s1493_s1 = inlined_call_operand.vmem [shape: f32[8], index: 1, kind: input, shape index: {}]   ;;  %s1494_s2 = inlined_call_operand.vmem [shape: f32[8], index: 2, kind: input, shape index: {}]   ;;  %s1495_s3 = inlined_call_operand.vmem [shape: f32[4,512], index: 3, kind: input, shape index: {}]   ;;  %s1496_s4 = inlined_call_operand.vmem [shape: f32[4,4], index: 4, kind: input, shape index: {}]   ;;  %s1497_s5 = inlined_call_operand.vmem [shape: f32[4,512], index: 5, kind: input, shape index: {}]   ;;  %s1498_s6 = inlined_call_operand.vmem [shape: f32[8,4,1], index: 6, kind: input, shape index: {}]   ;;  %s1499_s7 = inlined_call_operand.hbm [shape: f32[8,4,512], index: 7, kind: input, shape index: {}]   ;;  %s1500_s8 = inlined_call_operand.hbm [shape: f32[4,512], index: 8, kind: output, shape index: {}]  }
   0x1   :  { %1505 = sst [smem:[#allocation17_spill]] %s1492_s0 }
   0x2   :  { %13 = vsyncpa [#allocation5], 0 }
   0x3   :  { %14 = vsyncpa [#allocation6], 0 }
   0x4   :  { %15 = vsyncpa [#allocation9], 0 }
   0x5   :  { %16 = vsyncpa [#allocation3], 0 }
   0x6   :  { %18 = vsyncpa [#allocation3 + $0x1], 0 }
   0x7   :  { %19 = vsyncpa [#allocation4], 0  ;;  %s1215_s27 = smov 0   ;;  %s1217_s28 = smov 0  }
   0x8   :  { %s1219_s29 = smov 0   ;;  %s1221_s30 = smov 0  }
   0x9   :  { %s1223_s9 = smov 0   ;;  %s1225_s10 = smov 0  }
   0xa LB: > { %s1502_s11 = sadd.s32 4294967295, %s1159_s10   ;;  %p225_p0 = scmp.ne.s32.totalorder %s1143_s28, %s1139_s27  ;;  %s1159_s10 = sphi %s1225_s10, %s25_s10   ;;  %s1155_s9 = sphi %s1223_s9, %s1520_s9   ;;  %s1151_s30 = sphi %s1221_s30, %s1519_s30   ;;  %s1147_s29 = sphi %s1219_s29, %s1518_s29   ;;  %s1143_s28 = sphi %s1217_s28, %s1517_s28   ;;  %s1139_s27 = sphi %s1215_s27, %s1516_s27  }
   0xb   : > { %p1247_p1 = scmp.eq.s32.totalorder %s1502_s11, 0  ;;  %p863_p2 = scmp.ge.s32.totalorder %s1159_s10, 1 }
   0xc   : > { %p262_p3 = scmp.lt.s32.totalorder %s1159_s10, 9  ;;  %s284_s17 = sshll.u32 %s1493_s1, 4  ;;  %s285_s17 = int_to_ptr.vmem [resolvable:$true] %s284_s17 }
   0xd   : > { %s1506_s12 = scalar_select %p1247_p1, 1, 0 }
   0xe   : > { %p1255_p4 = por %p1247_p1, %p225_p0  ;;  %p1259_p5 = pnand %p863_p2, %p262_p3 }
   0xf   : > { %s295_s20 = sshll.u32 %s1494_s2, 4  ;;  %s1510_s0 = sld [smem:[#allocation17_spill]]  ;;  %s1277_s20 = int_to_ptr.vmem [resolvable:$true] %s295_s20 }
  0x10   : > { %s1507_s13 = scalar_select %p1255_p4, 1, 0 }
  0x11   : > { %p907_p6 = pneg %p1259_p5 }
  0x13   : > { %p1273_p7 = pnand %p907_p6, %p1247_p1 }
  0x15   : > { %s994_s24 = scalar_lea.hbm %s1510_s0, 16  ;;  %p996_p9 = pneg %p1273_p7 }
  0x16   : > { %p995_p8 = scmp.ne.s32.totalorder %s1510_s0, %s994_s24  ;;  %p1001_p12 = scmp.lt.u32.totalorder %s994_s24, %s1510_s0 }
  0x18   : > { %p997_p10 = pnand %p996_p9, %p995_p8 }
  0x1a   : > { %p998_p11 = pneg %p997_p10 }
  0x1c   : > { %p1003_p13 = pnand %p1001_p12, %p998_p11 }
  0x1e   : > { %1006 = shalt.err (!%p1003_p13)
}
  0x1f   : > { %s1161_s16 = smov [#allocation2]   ;;  %s1007_s22 = scalar_lea.vmem %s285_s17, 16 }
  0x20   : > { %910 = dma.hbm_to_smem (!%p1273_p7), %s1510_s0, 16, %s1161_s16, [#allocation5]  }
  0x21   : > { %p1008_p0 = scmp.ne.s32.totalorder %s285_s17, %s1007_s22  ;;  %p1015_p6 = scmp.lt.s32.totalorder %s285_s17, %s285_s17 }
  0x22   : > { %p1016_p8 = scmp.lt.s32.totalorder %s1007_s22, %s1007_s22 }
  0x23   : > { %p1010_p2 = pnand %p1008_p0, %p996_p9 }
  0x24   : > { %p1017_p10 = por %p1016_p8, %p1015_p6 }
  0x25   : > { %p1011_p3 = pneg %p1010_p2 }
  0x27   : > { %p1018_p4 = pnand %p1017_p10, %p1011_p3 }
  0x29   : > { %1021 = shalt.err (!%p1018_p4)
}
  0x2a   : > { %s1162_s23 = smov [#allocation7]   ;;  %s1022_s24 = scalar_lea.vmem %s1277_s20, 16 }
  0x2b   : > { %913 = dma.vmem_to_smem (!%p1273_p7), %s285_s17, 16, %s1162_s23, [#allocation6]  }
  0x2c   : > { %p1023_p11 = scmp.ne.s32.totalorder %s1277_s20, %s1022_s24  ;;  %p1030_p0 = scmp.lt.s32.totalorder %s1277_s20, %s1277_s20 }
  0x2d   : > { %p1031_p2 = scmp.lt.s32.totalorder %s1022_s24, %s1022_s24 }
  0x2e   : > { %p1025_p12 = pnand %p1023_p11, %p996_p9 }
  0x2f   : > { %p1032_p6 = por %p1031_p2, %p1030_p0 }
  0x30   : > { %p1026_p13 = pneg %p1025_p12 }
  0x32   : > { %p1033_p3 = pnand %p1032_p6, %p1026_p13 }
  0x34   : > { %1036 = shalt.err (!%p1033_p3)
}
  0x35   : > { %s1163_s25 = smov [#allocation8]   ;;  %s34_s17 = sadd.s32 1, %s1155_s9 }
  0x36   : > { %916 = dma.vmem_to_smem (!%p1273_p7), %s1277_s20, 16, %s1163_s25, [#allocation9]  }
  0x37   : > { %p35_p4 = scmp.ge.s32.totalorder %s34_s17, 8  ;;  %s205_s26 = ssub.s32 7, %s1155_s9 }
  0x38   : > { %s212_s27 = sadd.s32 1, %s1147_s29  ;;  %p219_p9 = scmp.ne.s32.totalorder %s1147_s29, %s1143_s28 }
  0x39   : > { %s1522_s17 = smov (%p35_p4, %s34_s17), 0  ;;  %p220_p8 = scmp.eq.s32.totalorder %s1159_s10, 0 }
  0x3a   : > { %p924_p10 = scmp.lt.s32.totalorder %s1159_s10, 8  ;;  %s206_s21 = ssub.s32 7, %s1522_s17 }
  0x3b   : > { %s336_s15 = sand.u32 1, %s1147_s29   ;;  %s207_s16 = ssub.s32 %s205_s26, %s206_s21 }
  0x3c   : > { %p221_p11 = por %p220_p8, %p219_p9  ;;  %p210_p12 = scmp.eq.s32.totalorder %s207_s16, 0 }
  0x3d   : > { %s870_s18 = sshll.u32 %s336_s15, 4  ;;  %s888_s19 = sshll.u32 %s205_s26, 8 }
  0x3e   : > { %s1325_s22 = scalar_select %p210_p12, %s1147_s29, %s212_s27  }
  0x3f   : > { %s1330_s24 = scalar_lea.hbm %s1499_s7, %s888_s19  ;;  %s340_s25 = scalar_lea.vmem [#allocation10], %s870_s18 }
  0x40   : > { %s351_s11 = sshll.u32 %s340_s25, 4  ;;  %p1332_p7 = pnand %p924_p10, %p221_p11  ;;  %s1336_s11 = int_to_ptr.vmem [resolvable:$true] %s351_s11 }
  0x41   : > { %s337_s26 = scalar_lea.sflag [#allocation3], %s336_s15  ;;  %s1037_s27 = scalar_lea.hbm %s1330_s24, 256 }
  0x42   : > { %p1038_p13 = scmp.ne.s32.totalorder %s1330_s24, %s1037_s27  ;;  %p1039_p0 = pneg %p1332_p7 }
  0x43   : > { %s1042_s18 = scalar_lea.hbm %s1499_s7, 2048  ;;  %p1043_p3 = scmp.lt.u32.totalorder %s1330_s24, %s1499_s7 }
  0x44   : > { %p1040_p2 = pnand %p1039_p0, %p1038_p13  ;;  %p1044_p4 = scmp.lt.u32.totalorder %s1042_s18, %s1037_s27 }
  0x45   : > { %p1046_p8 = scmp.lt.u32.totalorder %s1037_s27, %s1330_s24 }
  0x46   : > { %p1041_p6 = pneg %p1040_p2  ;;  %p1045_p9 = por %p1044_p4, %p1043_p3 }
  0x48   : > { %p1047_p10 = por %p1046_p8, %p1045_p9 }
  0x4a   : > { %p1048_p11 = pnand %p1047_p10, %p1041_p6 }
  0x4c   : > { %1051 = shalt.err (!%p1048_p11)
}
  0x4d   : > { %s1052_s15 = scalar_lea.vmem %s1336_s11, 256  ;;  %s1164_s23 = smov [#allocation10]  }
  0x4e   : > { %p1053_p12 = scmp.ne.s32.totalorder %s1336_s11, %s1052_s15  ;;  %s1057_s25 = sshll.u32 %s1164_s23, 4  ;;  %s1058_s25 = int_to_ptr.vmem [resolvable:$false] %s1057_s25 }
  0x4f   : > { %s1059_s21 = scalar_lea.vmem %s1058_s25, 512  ;;  %p1060_p1 = scmp.lt.s32.totalorder %s1336_s11, %s1058_s25 }
  0x50   : > { %p1055_p13 = pnand %p1053_p12, %p1039_p0  ;;  %p1061_p3 = scmp.lt.s32.totalorder %s1059_s21, %s1052_s15 }
  0x52   : > { %p1056_p2 = pneg %p1055_p13  ;;  %p1062_p4 = por %p1061_p3, %p1060_p1 }
  0x54   : > { %p1063_p9 = pnand %p1062_p4, %p1056_p2 }
  0x56   : > { %1066 = shalt.err (!%p1063_p9)
}
  0x57   : > { %920 = dma.hbm_to_vmem [thread:$0]  (!%p1332_p7), %s1330_s24, 256, %s1336_s11, %s337_s26  }
  0x58   : > { %360 = sbr.rel (%p1259_p5) target bundleno = 305 (0x131), region = 52  ;;  %p1512_p0 = scmp.ne.s32.totalorder (!%p1259_p5), %s1506_s12, 0 }
  0x5f   : > { %1118 = dma.done.wait (%p1512_p0), [#allocation5], 16  }
  0x60   : > { %1120 = vsyncadd (%p1512_p0), [#allocation5], 4294967280 }
  0x61   : > { %1122 = dma.done.wait (%p1512_p0), [#allocation6], 16  }
  0x62   : > { %1124 = vsyncadd (%p1512_p0), [#allocation6], 4294967280 }
  0x63   : > { %1126 = dma.done.wait (%p1512_p0), [#allocation9], 16  }
  0x64   : > { %1128 = vsyncadd (%p1512_p0), [#allocation9], 4294967280  ;;  %s374_s0 = sand.u32 1, %s1143_s28   ;;  %p1513_p1 = scmp.ne.s32.totalorder %s1507_s13, 0 }
  0x65   : > { %s1378_s11 = sshll.u32 %s374_s0, 4  ;;  %s375_s14 = scalar_lea.sflag [#allocation3], %s374_s0 }
  0x66   : > { %s378_s24 = scalar_lea.vmem [#allocation10], %s1378_s11 }
  0x67   : > { %1130 = dma.done.wait (%p1513_p1), %s375_s14, 256  }
  0x68   : > { %1132 = vsyncadd (%p1513_p1), %s375_s14, 4294967040 }
  0x69   : > { %383 = sfence }
  0x6a   : > { %s1386_s26 = ssub.s32 7, %s1151_s30  ;;  %p879_p7 = scmp.ne.s32.totalorder %s1151_s30, 0 }
  0x6b   : > { %p435_p5 = scmp.lt.s32.totalorder %s1386_s26, 7  ;;  %v448_v0 = vld [vmem:[%s1495_s3] sm:$0xff] (!%p879_p7)  ;;  %v449_v1 = vld [vmem:[%s1495_s3 + $0x8] sm:$0xff] (!%p879_p7) }
  0x6c   : > { %447 = sbr.rel (%p879_p7) target bundleno = 115 (0x73), region = 72  ;;  %450 = vst [vmem:[#allocation11] sm:$0xff] (!%p879_p7), %v448_v0  ;;  %451 = vst [vmem:[#allocation11 + $0x8] sm:$0xff] (!%p879_p7), %v449_v1 }
  0x6d   : > { %s436_s12 = scalar_select %p435_p5, %s1386_s26, 7 }
  0x6f   : > { %s878_s27 = sshll.u32 %s436_s12, 2 }
  0x70   : > { %s438_s19 = scalar_lea.vmem %s1498_s6, %s878_s27 }
  0x73 PF: > { %v454_v2 = vld [vmem:[%s1496_s4] sm:$0xf]  ;;  %v1165_v3 = vmov 0   ;;  %v1166_v4 = vmov 2   ;;  %v1167_v5 = vmov 1   ;;  %v1168_v6 = vmov 3  }
  0x74   : > { %986 = vset.pattern.permute.xlu0 %v1165_v3  ;;  %988 = vset.pattern.permute.xlu1 %v1166_v4  ;;  %v646_v7 = vld [vmem:[%s438_s19] sm:$0xf]  ;;  %v462_v8 = vlaneseq  ;;  %v1405_v13 = vld [vmem:[#allocation11 + $0x8] sm:$0xff]  ;;  %s1424_s0 = sld [smem:[#allocation2 + %s1386_s26]]  ;;  %p880_p6 = scmp.ge.s32.totalorder %s1151_s30, 7 }
  0x75   : > { %457 = vperm.xlu0 %986, %v454_v2   ;;  %551 = vperm.xlu1 %988, %v454_v2   ;;  %v1403_v12 = vld [vmem:[#allocation11] sm:$0xff]  ;;  %s672_s14 = sld [smem:[#allocation7 + %s1386_s26]] }
  0x76   : > { %v463_v9 = vshrl.u32 %v462_v8, 7  ;;  %s1434_s19 = sld [smem:[#allocation8 + %s1386_s26]] }
  0x78   : > { %v464_v10 = vsub.s32 0, %v463_v9  ;;  %v468_v11 = vsub.s32 4, %v463_v9  ;;  %v556_v14 = vsub.s32 2, %v463_v9  ;;  %v560_v15 = vsub.s32 6, %v463_v9 }
  0x79   : > { %987 = vset.pattern.permute.xlu0 %v1167_v5  ;;  %989 = vset.pattern.permute.xlu1 %v1168_v6  ;;  %v508_v16 = vsub.s32 1, %v463_v9  ;;  %v512_v17 = vsub.s32 5, %v463_v9  ;;  %v604_v18 = vsub.s32 3, %v463_v9  ;;  %v608_v19 = vsub.s32 7, %v463_v9 }
  0x7a   : > { %503 = vperm.xlu0 %987, %v454_v2   ;;  %599 = vperm.xlu1 %989, %v454_v2   ;;  %v465_v20 = vrot.slane %v1403_v12, %v464_v10  ;;  %v469_v21 = vrot.slane %v1403_v12, %v468_v11  ;;  %v473_v22 = vrot.slane %v1405_v13, %v464_v10 }
  0x7b   : > { %v477_v23 = vrot.slane %v1405_v13, %v468_v11  ;;  %v557_v24 = vrot.slane %v1403_v12, %v556_v14  ;;  %v561_v25 = vrot.slane %v1403_v12, %v560_v15  ;;  %v565_v26 = vrot.slane %v1405_v13, %v556_v14 }
  0x7c   : > { %v569_v27 = vrot.slane %v1405_v13, %v560_v15  ;;  %v509_v28 = vrot.slane %v1403_v12, %v508_v16  ;;  %v513_v29 = vrot.slane %v1403_v12, %v512_v17  ;;  %v517_v30 = vrot.slane %v1405_v13, %v508_v16  ;;  %v657_v15 = vld [vmem:[%s1497_s5 + $0x8] sm:$0xff] }
  0x7d   : > { %v521_v31 = vrot.slane %v1405_v13, %v512_v17  ;;  %v605_v32 = vrot.slane %v1403_v12, %v604_v18  ;;  %v609_v33 = vrot.slane %v1403_v12, %v608_v19  ;;  %v613_v34 = vrot.slane %v1405_v13, %v604_v18 }
  0x7e   : > { %990 = vset.pattern.permute.xlu1 %v1165_v3  ;;  %991 = vset.pattern.permute.xlu0 %v1165_v3  ;;  %v617_v35 = vrot.slane %v1405_v13, %v608_v19  ;;  %v485_v37 = vrot.slane %v465_v20, %v464_v10  ;;  %v489_v38 = vrot.slane %v469_v21, %v464_v10 }
  0x7f   : > { %649 = vperm.xlu1 %990, %v646_v7   ;;  %v493_v39 = vrot.slane %v473_v22, %v464_v10  ;;  %v497_v40 = vrot.slane %v477_v23, %v464_v10  ;;  %v577_v42 = vrot.slane %v557_v24, %v556_v14  ;;  %v581_v43 = vrot.slane %v561_v25, %v556_v14 }
  0x80   : > { %v585_v44 = vrot.slane %v565_v26, %v556_v14  ;;  %v589_v45 = vrot.slane %v569_v27, %v556_v14  ;;  %v529_v46 = vrot.slane %v509_v28, %v508_v16  ;;  %v533_v47 = vrot.slane %v513_v29, %v508_v16  ;;  %v656_v14 = vld [vmem:[%s1497_s5] sm:$0xff] }
  0x81   : > { %v537_v48 = vrot.slane %v517_v30, %v508_v16  ;;  %v541_v49 = vrot.slane %v521_v31, %v508_v16  ;;  %v625_v50 = vrot.slane %v605_v32, %v604_v18  ;;  %v629_v51 = vrot.slane %v609_v33, %v604_v18 }
  0x82   : > { %v633_v52 = vrot.slane %v613_v34, %v604_v18  ;;  %v637_v53 = vrot.slane %v617_v35, %v604_v18  ;;  %v660_v20 = vcombine.high %v656_v14, %v656_v14  ;;  %v661_v21 = vcombine.high %v657_v15, %v657_v15 }
  0x83   : > { %v669_v27 = vstv %s1424_s0  ;;  %v673_v32 = vstv %s672_s14 }
  0xf4   : > { %v458_v36 = vpop.permute.xlu0 %457  ;;  %v552_v41 = vpop.permute.xlu1 %551 }
  0xf5   : > { %v498_v54 = vmul.f32 %v485_v37, %v458_v36  ;;  %v499_v55 = vmul.f32 %v489_v38, %v458_v36  ;;  %v500_v56 = vmul.f32 %v493_v39, %v458_v36  ;;  %v501_v57 = vmul.f32 %v497_v40, %v458_v36  ;;  %v689_v37 = vld [vmem:[%s378_s24] sm:$0xff]  ;;  %v690_v38 = vld [vmem:[%s378_s24 + $0x8] sm:$0xff] }
  0xf6   : > { %v590_v58 = vmul.f32 %v577_v42, %v552_v41  ;;  %v591_v59 = vmul.f32 %v581_v43, %v552_v41  ;;  %v592_v60 = vmul.f32 %v585_v44, %v552_v41  ;;  %v593_v61 = vmul.f32 %v589_v45, %v552_v41 }
  0xf7   : > { %v691_v39 = vstv %s1434_s19  ;;  %v670_v40 = vmul.f32 %v669_v27, %v1403_v12  ;;  %v671_v41 = vmul.f32 %v669_v27, %v1405_v13 }
  0xf9   : > { %v504_v62 = vpop.permute.xlu0 %503  ;;  %v600_v63 = vpop.permute.xlu1 %599 }
  0xfa   : > { %v542_v0 = vmul.f32 %v529_v46, %v504_v62  ;;  %v543_v1 = vmul.f32 %v533_v47, %v504_v62  ;;  %v544_v2 = vmul.f32 %v537_v48, %v504_v62  ;;  %v545_v3 = vmul.f32 %v541_v49, %v504_v62 }
  0xfb   : > { %v638_v4 = vmul.f32 %v625_v50, %v600_v63  ;;  %v639_v5 = vmul.f32 %v629_v51, %v600_v63  ;;  %v640_v6 = vmul.f32 %v633_v52, %v600_v63  ;;  %v641_v7 = vmul.f32 %v637_v53, %v600_v63 }
  0xfc   : > { %v546_v8 = vadd.f32 %v542_v0, %v498_v54  ;;  %v547_v9 = vadd.f32 %v543_v1, %v499_v55  ;;  %v548_v10 = vadd.f32 %v544_v2, %v500_v56  ;;  %v549_v11 = vadd.f32 %v545_v3, %v501_v57 }
  0xfd   : > { %v692_v46 = vmul.f32 %v691_v39, %v689_v37  ;;  %v693_v47 = vmul.f32 %v691_v39, %v690_v38 }
  0xfe   : > { %v594_v16 = vadd.f32 %v590_v58, %v546_v8  ;;  %v595_v17 = vadd.f32 %v591_v59, %v547_v9  ;;  %v596_v18 = vadd.f32 %v592_v60, %v548_v10  ;;  %v597_v19 = vadd.f32 %v593_v61, %v549_v11  ;;  %v650_v22 = vpop.permute.xlu1 %649 }
 0x100   : > { %v642_v23 = vadd.f32 %v638_v4, %v594_v16  ;;  %v643_v24 = vadd.f32 %v639_v5, %v595_v17  ;;  %v644_v25 = vadd.f32 %v640_v6, %v596_v18  ;;  %v645_v26 = vadd.f32 %v641_v7, %v597_v19 }
 0x102   : > { %v652_v28 = vadd.f32 %v650_v22, %v642_v23  ;;  %v653_v29 = vadd.f32 %v650_v22, %v643_v24  ;;  %v654_v30 = vadd.f32 %v650_v22, %v644_v25  ;;  %v655_v31 = vadd.f32 %v650_v22, %v645_v26 }
 0x104   : > { %v664_v33 = vadd.f32 %v656_v14, %v652_v28  ;;  %v665_v34 = vadd.f32 %v660_v20, %v653_v29  ;;  %v666_v35 = vadd.f32 %v657_v15, %v654_v30  ;;  %v667_v36 = vadd.f32 %v661_v21, %v655_v31 }
 0x106   : > { %v674_v42 = vmul.f32 %v673_v32, %v664_v33  ;;  %v675_v43 = vmul.f32 %v673_v32, %v665_v34  ;;  %v676_v44 = vmul.f32 %v673_v32, %v666_v35  ;;  %v677_v45 = vmul.f32 %v673_v32, %v667_v36  ;;  %699 = sbr.rel (%p880_p6) target bundleno = 271 (0x10f), region = 76 }
 0x108   : > { %v682_v48 = vcombine.low %v674_v42, %v675_v43  ;;  %v683_v49 = vcombine.low %v676_v44, %v677_v45 }
 0x10a   : > { %v686_v50 = vsub.f32 %v670_v40, %v682_v48  ;;  %v687_v51 = vsub.f32 %v671_v41, %v683_v49 }
 0x10c   : > { %v694_v52 = vadd.f32 %v692_v46, %v686_v50  ;;  %v695_v53 = vadd.f32 %v693_v47, %v687_v51 }
 0x10e   : > { %700 = vst [vmem:[#allocation11] sm:$0xff] %v694_v52  ;;  %701 = vst [vmem:[#allocation11 + $0x8] sm:$0xff] %v695_v53 }
 0x10f PF: > { %p881_p8 = scmp.ne.s32.totalorder %s1151_s30, 7 }
 0x110   : > { %v882_v12 = vclamps-f32 (!%p881_p8), %v694_v52, 1.0  ;;  %v883_v13 = vclamps-f32 (!%p881_p8), %v695_v53, 1.0 }
 0x111   : > { %705 = sbr.rel (%p881_p8) target bundleno = 280 (0x118), region = 80 }
 0x112   : > { %710 = vst [vmem:[#allocation11] sm:$0xff] (!%p881_p8), %v882_v12  ;;  %711 = vst [vmem:[#allocation11 + $0x8] sm:$0xff] (!%p881_p8), %v883_v13 }
 0x118 PF: > { %s1514_s11 = sadd.s32 4294967295, %s1159_s10   ;;  %s1169_s26 = smov [#allocation11]  }
 0x119   : > { %p1448_p10 = scmp.eq.s32.totalorder %s1514_s11, 7  ;;  %s722_s20 = sshll.u32 %s1169_s26, 4  ;;  %s723_s20 = int_to_ptr.vmem [resolvable:$true] %s722_s20 }
 0x11a   : > { %s1067_s15 = scalar_lea.vmem %s723_s20, 256  ;;  %p1074_p2 = scmp.lt.s32.totalorder %s723_s20, %s723_s20 }
 0x11b   : > { %p1068_p11 = scmp.ne.s32.totalorder %s723_s20, %s1067_s15  ;;  %p1075_p3 = scmp.lt.s32.totalorder %s1067_s15, %s1067_s15 }
 0x11d   : > { %p1069_p12 = pnand %p1068_p11, %p1448_p10  ;;  %p1076_p4 = por %p1075_p3, %p1074_p2 }
 0x11f   : > { %p1070_p13 = pneg %p1069_p12 }
 0x121   : > { %p1077_p9 = pnand %p1076_p4, %p1070_p13 }
 0x123   : > { %1080 = shalt.err (!%p1077_p9)
}
 0x124   : > { %s1081_s23 = scalar_lea.hbm %s1500_s8, 256 }
 0x125   : > { %p1082_p0 = scmp.ne.s32.totalorder %s1500_s8, %s1081_s23  ;;  %p1087_p7 = scmp.lt.u32.totalorder %s1081_s23, %s1500_s8 }
 0x127   : > { %p1083_p1 = pnand %p1082_p0, %p1448_p10 }
 0x129   : > { %p1084_p5 = pneg %p1083_p1 }
 0x12b   : > { %p1089_p6 = pnand %p1087_p7, %p1084_p5 }
 0x12d   : > { %1092 = shalt.err (!%p1089_p6)
}
 0x12e   : > { %904 = dma.vmem_to_hbm [thread:$0]  (%p1448_p10), %s723_s20, 256, %s1500_s8, [#allocation4]  }
 0x12f   : > { %1134 = dma.done.wait (%p1448_p10), [#allocation4], 256  }
 0x130   : > { %1136 = vsyncadd (%p1448_p10), [#allocation4], 4294967040 }
 0x131 PF: > { %s25_s10 = sadd.s32 1, %s1159_s10   ;;  %s1516_s27 = smov %s1143_s28 }
 0x132   : > { %p22_p8 = scmp.ge.s32.totalorder %s25_s10, 10   ;;  %s1517_s28 = smov %s1147_s29 }
 0x133   : > { %s1518_s29 = smov %s1325_s22  ;;  %s1519_s30 = smov %s1155_s9 }
 0x134   : > { %s1520_s9 = smov %s1522_s17  ;;  %24 = sbr.rel (!%p22_p8) target bundleno = 10 (0xa), region = 125 }
 0x13b   :  { %735 = vsyncpa [#allocation3], 1 }
 0x13c   :  { %737 = vsyncpa [#allocation3 + $0x1], 1 }
 0x13d   :  { %738 = vsyncpa [#allocation4], 1 }
 0x13e   :  { %740 = vsyncpa [#allocation4 + $0x1], 1 }
 0x13f   :  { %741 = vsyncpa [#allocation5], 1 }
 0x140   :  { %743 = vsyncpa [#allocation5 + $0x1], 1 }
 0x141   :  { %744 = vsyncpa [#allocation6], 1 }
 0x142   :  { %746 = vsyncpa [#allocation6 + $0x1], 1 }
 0x143   :  { %747 = vsyncpa [#allocation9], 1 }

</bundles_post_ra>
